<compile_context>
chip_gen: v6e
topology: v6e:2x2x1
jax: 0.10.0
libtpu: 0.0.40
codegen_flags: <defaults>
</compile_context>

<pallas_src>
import jax
import jax.numpy as jnp
from jax.experimental import pallas as pl
from jax.experimental.pallas import tpu as pltpu


def mlp_kernel(p_ref, x_ref, o_ref):
    """p_ref: (16,) f32 in SMEM   [w1_0..3, b1, w2_0..2, b2_0..2, pad]
       x_ref: (4, TB) f32 in VMEM (feature-major, batch on lanes)
       o_ref: (3, TB) f32 in VMEM (class-major,   batch on lanes)
    """
    x = x_ref[...]                                             # (4, TB)

    # Hoisted constant construction (built once per kernel body).
    sub4 = jax.lax.broadcasted_iota(jnp.int32, (4, 1), 0)
    sub3 = jax.lax.broadcasted_iota(jnp.int32, (3, 1), 0)

    # ---- Layer 1: Linear(4, 1) as a column-broadcast mul + sublane reduce ----
    w1c = jnp.where(sub4 == 0, p_ref[0],
          jnp.where(sub4 == 1, p_ref[1],
          jnp.where(sub4 == 2, p_ref[2], p_ref[3])))           # (4, 1)
    h = jnp.sum(x * w1c, axis=0, keepdims=True) + p_ref[4]     # (1, TB)

    # ---- Tanh on the EUP ----
    t = jnp.tanh(h)                                            # (1, TB)

    # ---- Layer 2: Linear(1, 3) as a rank-1 broadcast FMA ----
    w2c = jnp.where(sub3 == 0, p_ref[5],
          jnp.where(sub3 == 1, p_ref[6], p_ref[7]))            # (3, 1)
    b2c = jnp.where(sub3 == 0, p_ref[8],
          jnp.where(sub3 == 1, p_ref[9], p_ref[10]))           # (3, 1)

    o_ref[...] = (w2c * t + b2c).astype(o_ref.dtype)           # (3, TB), lane-dense


def neural_network_forward(x, w1, b1, w2, b2, *, block_b=262144):
    """Forward pass of NeuralNetwork.

    x : (B, 4)  -- Flatten is a no-op for 2-D input
    w1: (1, 4), b1: (1,)   (nn.Linear(4, 1) layout)
    w2: (3, 1), b2: (3,)   (nn.Linear(1, 3) layout)
    returns logits (B, 3) in float32
    """
    B = x.shape[0]

    # Pack every parameter into a single small SMEM array (one DMA, ~64 bytes).
    params = jnp.concatenate([
        w1.reshape(-1).astype(jnp.float32),        # [0:4]   w1
        b1.reshape(-1).astype(jnp.float32),        # [4]     b1
        w2.reshape(-1).astype(jnp.float32),        # [5:8]   w2
        b2.reshape(-1).astype(jnp.float32),        # [8:11]  b2
        jnp.zeros((5,), jnp.float32),              # pad to 16
    ])

    # Feature-major layout: batch on the lane axis -> lane-dense loads/stores.
    # (Transpose is left for XLA to fuse under the surrounding jit.)
    xt = x.astype(jnp.float32).T                   # (4, B)

    if B <= block_b:
        tb = B           # single tile: block equals full array extent (always legal)
    else:
        tb = block_b     # 262144 = 2048 * 128 -> lane-aligned, ~14 MiB double-buffered

    grid = (pl.cdiv(B, tb),)                       # partial last block handled by Pallas

    out = pl.pallas_call(
        mlp_kernel,
        out_shape=jax.ShapeDtypeStruct((3, B), jnp.float32),
        grid=grid,
        in_specs=[
            pl.BlockSpec(memory_space=pltpu.MemorySpace.SMEM),   # packed params
            pl.BlockSpec((4, tb), lambda i: (0, i)),             # x tile
        ],
        out_specs=pl.BlockSpec((3, tb), lambda i: (0, i)),
        compiler_params=pltpu.CompilerParams(
            dimension_semantics=("parallel",),
        ),
        cost_estimate=pl.CostEstimate(
            flops=14 * B,                          # 2*B*4 + 2*B*3
            transcendentals=B,                     # one tanh per row
            bytes_accessed=28 * B + 64,            # 16 B in + 12 B out per row + params
        ),
    )(params, xt)

    return out.T                                   # (B, 3); transpose fuses under jit


if __name__ == "__main__":
    key = jax.random.PRNGKey(0)
    kx, k1, k2, k3, k4 = jax.random.split(key, 5)

    B = 8  # small batch of "iris rows" (each row has 4 features)
    x = jax.random.normal(kx, (B, 4), dtype=jnp.float32)

    # Deterministic parameter init in PyTorch nn.Linear layout.
    w1 = jax.random.normal(k1, (1, 4), dtype=jnp.float32) * 0.5   # Linear(4,1).weight
    b1 = jax.random.normal(k2, (1,), dtype=jnp.float32) * 0.1     # Linear(4,1).bias
    w2 = jax.random.normal(k3, (3, 1), dtype=jnp.float32) * 0.5   # Linear(1,3).weight
    b2 = jax.random.normal(k4, (3,), dtype=jnp.float32) * 0.1     # Linear(1,3).bias

    fwd = jax.jit(neural_network_forward)          # one jit: transposes fuse with kernel
    out = fwd(x, w1, b1, w2, b2)
    out = jax.block_until_ready(out)

    # Pure-JAX reference (same float32 math).
    ref = jnp.tanh(x @ w1.T + b1) @ w2.T + b2
    assert out.shape == (B, 3)
    assert jnp.allclose(out, ref, atol=1e-5, rtol=1e-5), "mismatch vs reference"

    print("KERNEL_OK")
</pallas_src>

<mosaic_0001>
module attributes {stable_mosaic.version = 11 : i64} {
  func.func @mlp_kernel(%arg0: i32, %arg1: memref<16xf32, #tpu.memory_space<smem>>, %arg2: memref<4x8xf32, #tpu.memory_space<vmem>>, %arg3: memref<3x8xf32, #tpu.memory_space<vmem>>) attributes {dimension_semantics = [#tpu.dimension_semantics<parallel>], iteration_bounds = array<i64: 1>, scalar_prefetch = 0 : i64, scratch_operands = 0 : i64, tpu.core_type = #tpu.core_type<tc>, window_params = [{transform_indices = @transform_0, window_bounds = array<i64: 16>}, {transform_indices = @transform_1, window_bounds = array<i64: 4, 8>}, {transform_indices = @transform_2, window_bounds = array<i64: 3, 8>}]} {
    %c0 = arith.constant 0 : index
    %c0_0 = arith.constant 0 : index
    %0 = vector.load %arg2[%c0, %c0_0] : memref<4x8xf32, #tpu.memory_space<vmem>>, vector<4x8xf32>
    %1 = tpu.iota {dimensions = array<i32: 0>} : vector<4x1xi32>
    %2 = tpu.iota {dimensions = array<i32: 0>} : vector<3x1xi32>
    %c0_i32 = arith.constant 0 : i32
    %3 = vector.broadcast %c0_i32 : i32 to vector<4x1xi32>
    %4 = arith.cmpi eq, %1, %3 : vector<4x1xi32>
    %c0_1 = arith.constant 0 : index
    %5 = memref.load %arg1[%c0_1] : memref<16xf32, #tpu.memory_space<smem>>
    %c1_i32 = arith.constant 1 : i32
    %6 = vector.broadcast %c1_i32 : i32 to vector<4x1xi32>
    %7 = arith.cmpi eq, %1, %6 : vector<4x1xi32>
    %c1 = arith.constant 1 : index
    %8 = memref.load %arg1[%c1] : memref<16xf32, #tpu.memory_space<smem>>
    %c2_i32 = arith.constant 2 : i32
    %9 = vector.broadcast %c2_i32 : i32 to vector<4x1xi32>
    %10 = arith.cmpi eq, %1, %9 : vector<4x1xi32>
    %c2 = arith.constant 2 : index
    %11 = memref.load %arg1[%c2] : memref<16xf32, #tpu.memory_space<smem>>
    %c3 = arith.constant 3 : index
    %12 = memref.load %arg1[%c3] : memref<16xf32, #tpu.memory_space<smem>>
    %13 = vector.broadcast %11 : f32 to vector<4x1xf32>
    %14 = vector.broadcast %12 : f32 to vector<4x1xf32>
    %15 = arith.select %10, %13, %14 : vector<4x1xi1>, vector<4x1xf32>
    %16 = vector.broadcast %8 : f32 to vector<4x1xf32>
    %17 = arith.select %7, %16, %15 : vector<4x1xi1>, vector<4x1xf32>
    %18 = vector.broadcast %5 : f32 to vector<4x1xf32>
    %19 = arith.select %4, %18, %17 : vector<4x1xi1>, vector<4x1xf32>
    %20 = vector.broadcast %19 : vector<4x1xf32> to vector<4x8xf32>
    %21 = arith.mulf %0, %20 : vector<4x8xf32>
    %cst = arith.constant dense<0.000000e+00> : vector<8xf32>
    %22 = vector.multi_reduction <add>, %21, %cst [0] : vector<4x8xf32> to vector<8xf32>
    %23 = vector.shape_cast %22 : vector<8xf32> to vector<1x8xf32>
    %c4 = arith.constant 4 : index
    %24 = memref.load %arg1[%c4] : memref<16xf32, #tpu.memory_space<smem>>
    %25 = vector.broadcast %24 : f32 to vector<1x8xf32>
    %26 = arith.addf %23, %25 : vector<1x8xf32>
    %27 = math.tanh %26 : vector<1x8xf32>
    %c0_i32_2 = arith.constant 0 : i32
    %28 = vector.broadcast %c0_i32_2 : i32 to vector<3x1xi32>
    %29 = arith.cmpi eq, %2, %28 : vector<3x1xi32>
    %c5 = arith.constant 5 : index
    %30 = memref.load %arg1[%c5] : memref<16xf32, #tpu.memory_space<smem>>
    %c1_i32_3 = arith.constant 1 : i32
    %31 = vector.broadcast %c1_i32_3 : i32 to vector<3x1xi32>
    %32 = arith.cmpi eq, %2, %31 : vector<3x1xi32>
    %c6 = arith.constant 6 : index
    %33 = memref.load %arg1[%c6] : memref<16xf32, #tpu.memory_space<smem>>
    %c7 = arith.constant 7 : index
    %34 = memref.load %arg1[%c7] : memref<16xf32, #tpu.memory_space<smem>>
    %35 = vector.broadcast %33 : f32 to vector<3x1xf32>
    %36 = vector.broadcast %34 : f32 to vector<3x1xf32>
    %37 = arith.select %32, %35, %36 : vector<3x1xi1>, vector<3x1xf32>
    %38 = vector.broadcast %30 : f32 to vector<3x1xf32>
    %39 = arith.select %29, %38, %37 : vector<3x1xi1>, vector<3x1xf32>
    %c0_i32_4 = arith.constant 0 : i32
    %40 = vector.broadcast %c0_i32_4 : i32 to vector<3x1xi32>
    %41 = arith.cmpi eq, %2, %40 : vector<3x1xi32>
    %c8 = arith.constant 8 : index
    %42 = memref.load %arg1[%c8] : memref<16xf32, #tpu.memory_space<smem>>
    %c1_i32_5 = arith.constant 1 : i32
    %43 = vector.broadcast %c1_i32_5 : i32 to vector<3x1xi32>
    %44 = arith.cmpi eq, %2, %43 : vector<3x1xi32>
    %c9 = arith.constant 9 : index
    %45 = memref.load %arg1[%c9] : memref<16xf32, #tpu.memory_space<smem>>
    %c10 = arith.constant 10 : index
    %46 = memref.load %arg1[%c10] : memref<16xf32, #tpu.memory_space<smem>>
    %47 = vector.broadcast %45 : f32 to vector<3x1xf32>
    %48 = vector.broadcast %46 : f32 to vector<3x1xf32>
    %49 = arith.select %44, %47, %48 : vector<3x1xi1>, vector<3x1xf32>
    %50 = vector.broadcast %42 : f32 to vector<3x1xf32>
    %51 = arith.select %41, %50, %49 : vector<3x1xi1>, vector<3x1xf32>
    %52 = vector.broadcast %39 : vector<3x1xf32> to vector<3x8xf32>
    %53 = vector.broadcast %27 : vector<1x8xf32> to vector<3x8xf32>
    %54 = arith.mulf %52, %53 : vector<3x8xf32>
    %55 = vector.broadcast %51 : vector<3x1xf32> to vector<3x8xf32>
    %56 = arith.addf %54, %55 : vector<3x8xf32>
    %c0_6 = arith.constant 0 : index
    %c0_7 = arith.constant 0 : index
    %57 = vector.load %arg3[%c0_6, %c0_7] : memref<3x8xf32, #tpu.memory_space<vmem>>, vector<3x8xf32>
    tpu.vector_store %arg3[%c0_6, %c0_7], %56 {strides = array<i32>} : memref<3x8xf32, #tpu.memory_space<vmem>>, vector<3x8xf32>,
    return
  }
  func.func @transform_0(%arg0: i32) -> i32 {
    %c0_i32 = arith.constant 0 : i32
    %c0_i32_0 = arith.constant 0 : i32
    return %c0_i32 : i32
  }
  func.func @transform_1(%arg0: i32) -> (i32, i32) {
    %c0_i32 = arith.constant 0 : i32
    %c0_i32_0 = arith.constant 0 : i32
    return %c0_i32, %arg0 : i32, i32
  }
  func.func @transform_2(%arg0: i32) -> (i32, i32) {
    %c0_i32 = arith.constant 0 : i32
    %c0_i32_0 = arith.constant 0 : i32
    return %c0_i32, %arg0 : i32, i32
  }
}

</mosaic_0001>

<bundles_post_ra>
// kernel: neural_network_forward.1
= control target key start
LH: loop header
LB: loop body
LE: loop exit
PB: predicated region body
PF: predicated region fallthrough
CT: control target
= control target key end

     0   :  { %7 = vsyncpa [#allocation4], 0  ;;  %s172_s0 = inlined_call_operand.vmem [shape: f32[16], index: 0, kind: input, shape index: {}]   ;;  %s173_s1 = inlined_call_operand.vmem [shape: f32[4,8], index: 1, kind: input, shape index: {}]   ;;  %s174_s2 = inlined_call_operand.hbm [shape: f32[3,8], index: 2, kind: output, shape index: {}]  }
   0x1   :  { %8 = vsyncpa [#allocation3], 0  ;;  %s15_s11 = sshll.u32 %s172_s0, 4  ;;  %s16_s11 = int_to_ptr.vmem [resolvable:$true] %s15_s11 }
   0x2   :  { %s104_s12 = scalar_lea.vmem %s16_s11, 16  ;;  %p109_p1 = scmp.lt.s32.totalorder %s16_s11, %s16_s11 }
   0x3   :  { %p105_p0 = scmp.ne.s32.totalorder %s16_s11, %s104_s12  ;;  %p110_p2 = scmp.lt.s32.totalorder %s104_s12, %s104_s12 }
   0x5   :  { %p111_p3 = por %p110_p2, %p109_p1 }
   0x7   :  { %p112_p4 = pnand %p111_p3, %p105_p0 }
   0x9   :  { %115 = shalt.err (!%p112_p4)
}
   0xa   :  { %s140_s13 = smov [#allocation2]  }
   0xb   :  { %18 = dma.vmem_to_smem %s16_s11, 16, %s140_s13, [#allocation4]  }
   0xc   :  { %136 = dma.done.wait [#allocation4], 16  }
   0xd   :  { %137 = vsyncadd [#allocation4], 4294967280 }
   0xe   :  { %24 = sfence }
   0xf   :  { %v26_v0 = vlaneseq  ;;  %s29_s14 = sld [smem:[#allocation2]]  ;;  %v25_v6 = vld [vmem:[%s173_s1] sm:$0xf]  ;;  %vm43_vm3 = vcmask 60416   ;;  %s141_s25 = smov [#allocation5]   ;;  %vm73_vm4 = vcmask 59392  }
  0x10   :  { %s90_s15 = sld [smem:[#allocation2 + $0x1]]  ;;  %s81_s26 = sshll.u32 %s141_s25, 4  ;;  %s82_s26 = int_to_ptr.vmem [resolvable:$true] %s81_s26 }
  0x11   :  { %s91_s16 = sld [smem:[#allocation2 + $0x2]]  ;;  %v27_v1 = vshrl.u32 %v26_v0, 7  ;;  %s116_s27 = scalar_lea.vmem %s82_s26, 64 }
  0x12   :  { %s92_s17 = sld [smem:[#allocation2 + $0x3]]  ;;  %p117_p5 = scmp.ne.s32.totalorder %s82_s26, %s116_s27 }
  0x13   :  { %vm32_vm0 = vcmp.eq.s32.totalorder %v27_v1, 2  ;;  %vm30_vm1 = vcmp.eq.s32.totalorder %v27_v1, 1  ;;  %vm28_vm2 = vcmp.eq.s32.totalorder %v27_v1, 0  ;;  %s93_s19 = sld [smem:[#allocation2 + $0x4]]  ;;  %p121_p6 = scmp.lt.s32.totalorder %s82_s26, %s82_s26 }
  0x14   :  { %s95_s20 = sld [smem:[#allocation2 + $0x6]]  ;;  %p122_p7 = scmp.lt.s32.totalorder %s116_s27, %s116_s27 }
  0x15   :  { %v40_v5 = vstv %s29_s14  ;;  %s96_s21 = sld [smem:[#allocation2 + $0x7]] }
  0x16   :  { %v38_v3 = vstv %s90_s15  ;;  %s98_s1 = sld [smem:[#allocation2 + $0x9]]  ;;  %p123_p8 = por %p122_p7, %p121_p6 }
  0x17   :  { %v35_v2 = vstv %s91_s16  ;;  %s99_s22 = sld [smem:[#allocation2 + $0xa]] }
  0x18   :  { %v36_v4 = vstv %s92_s17  ;;  %s94_s23 = sld [smem:[#allocation2 + $0x5]]  ;;  %p124_p9 = pnand %p123_p8, %p117_p5 }
  0x19   :  { %v37_v7 = vsel %vm32_vm0, %v35_v2, %v36_v4  ;;  %v52_v17 = vstv %s93_s19  ;;  %s97_s24 = sld [smem:[#allocation2 + $0x8]] }
  0x1a   :  { %v39_v8 = vsel %vm30_vm1, %v38_v3, %v37_v7  ;;  %v58_v20 = vstv %s95_s20 }
  0x1b   :  { %v41_v9 = vsel %vm28_vm2, %v40_v5, %v39_v8  ;;  %v59_v21 = vstv %s96_s21 }
  0x1c   :  { %v42_v10 = vmul.f32 %v41_v9, %v25_v6  ;;  %v66_v22 = vstv %s98_s1  ;;  %v60_v24 = vsel %vm30_vm1, %v58_v20, %v59_v21 }
  0x1d   :  { %v67_v23 = vstv %s99_s22 }
  0x1e   :  { %v44_v11 = vsel %vm43_vm3, %v42_v10, 0.0  ;;  %v61_v25 = vstv %s94_s23  ;;  %v68_v26 = vsel %vm30_vm1, %v66_v22, %v67_v23 }
  0x1f   :  { %v45_v12 = vrot.slane %v44_v11, 4  ;;  %v69_v27 = vstv %s97_s24  ;;  %v62_v28 = vsel %vm28_vm2, %v61_v25, %v60_v24 }
  0x20   :  { %v70_v30 = vsel %vm28_vm2, %v69_v27, %v68_v26 }
  0x21   :  { %v46_v13 = vadd.f32 %v45_v12, %v44_v11 }
  0x23   :  { %v47_v14 = vrot.slane %v46_v13, 2 }
  0x25   :  { %v48_v15 = vadd.f32 %v47_v14, %v46_v13 }
  0x27   :  { %v49_v16 = vrot.slane %v48_v15, 1 }
  0x29   :  { %v50_v18 = vadd.f32 %v49_v16, %v48_v15 }
  0x2b   :  { %v53_v19 = vadd.f32 %v52_v17, %v50_v18 }
  0x2d   :  { %102 = vtanh.f32 %v53_v19 }
  0x3a   :  { %v103_v29 = vpop.eup %102 }
  0x3b   :  { %v71_v31 = vmul.f32 %v103_v29, %v62_v28 }
  0x3d   :  { %v72_v32 = vadd.f32 %v71_v31, %v70_v30 }
  0x3f   :  { %74 = vst.msk [vmem:[#allocation5] sm:$0x7] %vm73_vm4, %v72_v32 }
  0x40   :  { %127 = shalt.err (!%p124_p9)
}
  0x41   :  { %84 = dma.vmem_to_hbm [thread:$0]  %s82_s26, 64, %s174_s2, [#allocation3]  }
  0x42   :  { %138 = dma.done.wait [#allocation3], 64  }
  0x43   :  { %139 = vsyncadd [#allocation3], 4294967232 }
  0x44   :  { %88 = vsyncpa [#allocation3], 1 }
  0x45   :  { %89 = vsyncpa [#allocation4], 1 }

</bundles_post_ra>
